<compile_context>
chip_gen: v6e
topology: v6e:2x2x1
jax: 0.10.0
libtpu: 0.0.40
codegen_flags: <defaults>
</compile_context>

<pallas_src>
import functools

import jax
import jax.numpy as jnp
from jax.experimental import pallas as pl
from jax.experimental.pallas import tpu as pltpu


def _round_up(x: int, m: int) -> int:
    return (x + m - 1) // m * m


def _vmem_capacity_bytes() -> int:
    """Per-TensorCore VMEM capacity; conservative 64 MiB (v7x) fallback."""
    try:
        info = pltpu.get_tpu_info()
        cap = getattr(info, "vmem_capacity_bytes", None)
        if cap:
            return int(cap)
    except Exception:
        pass
    return 64 << 20


def _fused_mlp_kernel(*refs, num_layers: int):
    """refs = (x_ref, w0_ref, b0_ref, w1_ref, b1_ref, ..., o_ref).

    Computes h = ReLU(...ReLU(x @ W0 + b0)...) @ W_{L-1} + b_{L-1} entirely in
    VMEM/vregs. Weights are pre-transposed to (in, out) and stored in bf16;
    matmuls accumulate in f32, bias add / ReLU stay in f32.
    """
    x_ref = refs[0]
    o_ref = refs[-1]
    h = x_ref[...]                                          # (tm, d0_pad) f32
    for l in range(num_layers):
        w = refs[1 + 2 * l][...]                            # (d_l_pad, d_{l+1}_pad) bf16
        b = refs[2 + 2 * l][...]                            # (1, d_{l+1}_pad) f32
        h = jnp.dot(h.astype(w.dtype), w,
                    preferred_element_type=jnp.float32) + b  # f32 accumulate
        if l < num_layers - 1:
            h = jnp.maximum(h, 0.0)                          # ReLU (f32 VPU path)
    o_ref[...] = h.astype(o_ref.dtype)


def prepare_params(params, weight_dtype=jnp.bfloat16):
    """ONE-TIME prep (hoist out of the per-call path!).

    torch (out,in) weights -> (in,out) bf16, zero-padded to 128-lane multiples;
    biases kept f32.
    """
    dims = [params[0][0].shape[1]] + [w.shape[0] for w, _ in params]
    dims_pad = [_round_up(d, 128) for d in dims]
    prepped = []
    for l, (w, b) in enumerate(params):
        out_f, in_f = w.shape
        wp = (jnp.zeros((dims_pad[l], dims_pad[l + 1]), weight_dtype)
              .at[:in_f, :out_f].set(w.T.astype(weight_dtype)))
        bp = (jnp.zeros((1, dims_pad[l + 1]), jnp.float32)
              .at[:, :out_f].set(b[None, :]))
        prepped.append((wp, bp))
    return tuple(prepped), dims, dims_pad


@functools.partial(jax.jit, static_argnames=("out_features",))
def nn_fc_forward(x, prepped, *, out_features):
    """Forward pass of NN_FC via one fused Pallas kernel (torch semantics)."""
    B, in_f = x.shape
    L = len(prepped)
    dims_pad = [prepped[0][0].shape[0]] + [wp.shape[1] for wp, _ in prepped]
    d0_pad, dlast_pad = dims_pad[0], dims_pad[-1]

    # ---- static, per-chip VMEM-budgeted batch-tile sizing ----
    vmem_budget = min(int(0.7 * _vmem_capacity_bytes()), 64 << 20)
    w_bytes = sum(int(wp.size) * wp.dtype.itemsize for wp, _ in prepped)
    b_bytes = sum(int(bp.size) * bp.dtype.itemsize for _, bp in prepped)
    resident = 2 * (w_bytes + b_bytes)          # pipeline double-buffers these
    per_row = (2 * d0_pad * 4                   # input block (double-buffered, f32)
               + 2 * dlast_pad * 4              # output block (double-buffered, f32)
               + max(dims_pad) * 4              # live f32 intermediate
               + max(dims_pad) * 2)             # bf16 matmul-input temp
    tm_cap = (vmem_budget - resident) // per_row
    tm_cap = max(8, min(512, (tm_cap // 8) * 8))

    B8 = _round_up(B, 8)
    num_tiles = max(1, -(-B8 // tm_cap))
    if num_tiles == 1 and B8 >= 16:
        num_tiles = 2                           # v7x: give both TensorCores work
    tm = _round_up(-(-B8 // num_tiles), 8)
    B_pad = num_tiles * tm

    # Pad activations only when actually needed (skip when already aligned).
    if B_pad == B and in_f == d0_pad:
        x_pad = x
    else:
        x_pad = jnp.zeros((B_pad, d0_pad), jnp.float32).at[:B, :in_f].set(x)

    flat_inputs = [x_pad]
    in_specs = [pl.BlockSpec((tm, d0_pad), lambda i: (i, 0))]
    for wp, bp in prepped:
        flat_inputs += [wp, bp]
        in_specs += [
            # Weights/biases: full-array blocks, index_map ignores the batch
            # grid index -> VMEM-resident across all batch tiles.
            pl.BlockSpec(wp.shape, lambda i: (0, 0)),
            pl.BlockSpec(bp.shape, lambda i: (0, 0)),
        ]

    kernel = functools.partial(_fused_mlp_kernel, num_layers=L)
    out_pad = pl.pallas_call(
        kernel,
        out_shape=jax.ShapeDtypeStruct((B_pad, dlast_pad), jnp.float32),
        grid_spec=pltpu.PrefetchScalarGridSpec(
            num_scalar_prefetch=0,
            grid=(num_tiles,),
            in_specs=in_specs,
            out_specs=pl.BlockSpec((tm, dlast_pad), lambda i: (i, 0)),
        ),
        compiler_params=pltpu.CompilerParams(
            dimension_semantics=("parallel",),
            vmem_limit_bytes=vmem_budget,
        ),
    )(*flat_inputs)

    return out_pad[:B, :out_features]


def init_params(layers, key):
    """Deterministic init mimicking torch.nn.Linear defaults U(-1/sqrt(fan_in), ...)."""
    params = []
    for l in range(len(layers) - 1):
        fan_in, fan_out = layers[l], layers[l + 1]
        key, kw, kb = jax.random.split(key, 3)
        bound = 1.0 / jnp.sqrt(jnp.float32(fan_in))
        w = jax.random.uniform(kw, (fan_out, fan_in), jnp.float32, -bound, bound)
        b = jax.random.uniform(kb, (fan_out,), jnp.float32, -bound, bound)
        params.append((w, b))
    return params


def reference_forward(x, params):
    """Plain-JAX f32 reference (torch layout: y = x @ W^T + b)."""
    L = len(params)
    for l, (w, b) in enumerate(params):
        x = x @ w.T + b
        if l < L - 1:
            x = jnp.maximum(x, 0.0)
    return x


if __name__ == "__main__":
    key = jax.random.PRNGKey(0)
    layers = [16, 32, 32, 8]   # NN_FC(layers=[16, 32, 32, 8])
    batch = 4

    kx, kp = jax.random.split(key)
    x = jax.random.normal(kx, (batch, layers[0]), jnp.float32)
    params = init_params(layers, kp)

    # One-time weight prep (padded / transposed / bf16) — reused across calls.
    prepped, dims, dims_pad = prepare_params(params)

    out = jax.block_until_ready(nn_fc_forward(x, prepped, out_features=layers[-1]))

    ref = reference_forward(x, params)
    assert out.shape == (batch, layers[-1])
    # bf16 matmul inputs with f32 accumulation -> small drift vs. the pure-f32
    # reference; tolerance loosened accordingly.
    assert jnp.allclose(out, ref, atol=3e-2, rtol=3e-2)

    print("KERNEL_OK")
</pallas_src>

<mosaic_0001>
module attributes {stable_mosaic.version = 11 : i64} {
  func.func @_fused_mlp_kernel(%arg0: i32, %arg1: memref<8x128xf32, #tpu.memory_space<vmem>>, %arg2: memref<128x128xbf16, #tpu.memory_space<vmem>>, %arg3: memref<1x128xf32, #tpu.memory_space<vmem>>, %arg4: memref<128x128xbf16, #tpu.memory_space<vmem>>, %arg5: memref<1x128xf32, #tpu.memory_space<vmem>>, %arg6: memref<128x128xbf16, #tpu.memory_space<vmem>>, %arg7: memref<1x128xf32, #tpu.memory_space<vmem>>, %arg8: memref<8x128xf32, #tpu.memory_space<vmem>>) attributes {dimension_semantics = [#tpu.dimension_semantics<parallel>], iteration_bounds = array<i64: 1>, scalar_prefetch = 0 : i64, scratch_operands = 0 : i64, tpu.core_type = #tpu.core_type<tc>, window_params = [{transform_indices = @transform_0, window_bounds = array<i64: 8, 128>}, {pipeline_mode = #tpu.pipeline_mode<synchronous>, transform_indices = @transform_1, window_bounds = array<i64: 128, 128>}, {pipeline_mode = #tpu.pipeline_mode<synchronous>, transform_indices = @transform_2, window_bounds = array<i64: 1, 128>}, {pipeline_mode = #tpu.pipeline_mode<synchronous>, transform_indices = @transform_3, window_bounds = array<i64: 128, 128>}, {pipeline_mode = #tpu.pipeline_mode<synchronous>, transform_indices = @transform_4, window_bounds = array<i64: 1, 128>}, {pipeline_mode = #tpu.pipeline_mode<synchronous>, transform_indices = @transform_5, window_bounds = array<i64: 128, 128>}, {pipeline_mode = #tpu.pipeline_mode<synchronous>, transform_indices = @transform_6, window_bounds = array<i64: 1, 128>}, {transform_indices = @transform_7, window_bounds = array<i64: 8, 128>}]} {
    %c0 = arith.constant 0 : index
    %c0_0 = arith.constant 0 : index
    %0 = vector.load %arg1[%c0, %c0_0] : memref<8x128xf32, #tpu.memory_space<vmem>>, vector<8x128xf32>
    %c0_1 = arith.constant 0 : index
    %c0_2 = arith.constant 0 : index
    %1 = vector.load %arg2[%c0_1, %c0_2] : memref<128x128xbf16, #tpu.memory_space<vmem>>, vector<128x128xbf16>
    %c0_3 = arith.constant 0 : index
    %c0_4 = arith.constant 0 : index
    %2 = vector.load %arg3[%c0_3, %c0_4] : memref<1x128xf32, #tpu.memory_space<vmem>>, vector<1x128xf32>
    %3 = arith.truncf %0 : vector<8x128xf32> to vector<8x128xbf16>
    %cst = arith.constant dense<0.000000e+00> : vector<8x128xf32>
    %4 = tpu.matmul %3, %1, %cst {dimension_numbers = #tpu.dot_dimension_numbers<[1], [0], [0], [1], [0, 0, 1, 1], [], []>} : vector<8x128xbf16>, vector<128x128xbf16>, vector<8x128xf32> -> vector<8x128xf32>
    %5 = vector.broadcast %2 : vector<1x128xf32> to vector<8x128xf32>
    %6 = arith.addf %4, %5 : vector<8x128xf32>
    %cst_5 = arith.constant 0.000000e+00 : f32
    %7 = vector.broadcast %cst_5 : f32 to vector<8x128xf32>
    %8 = arith.maximumf %6, %7 : vector<8x128xf32>
    %c0_6 = arith.constant 0 : index
    %c0_7 = arith.constant 0 : index
    %9 = vector.load %arg4[%c0_6, %c0_7] : memref<128x128xbf16, #tpu.memory_space<vmem>>, vector<128x128xbf16>
    %c0_8 = arith.constant 0 : index
    %c0_9 = arith.constant 0 : index
    %10 = vector.load %arg5[%c0_8, %c0_9] : memref<1x128xf32, #tpu.memory_space<vmem>>, vector<1x128xf32>
    %11 = arith.truncf %8 : vector<8x128xf32> to vector<8x128xbf16>
    %cst_10 = arith.constant dense<0.000000e+00> : vector<8x128xf32>
    %12 = tpu.matmul %11, %9, %cst_10 {dimension_numbers = #tpu.dot_dimension_numbers<[1], [0], [0], [1], [0, 0, 1, 1], [], []>} : vector<8x128xbf16>, vector<128x128xbf16>, vector<8x128xf32> -> vector<8x128xf32>
    %13 = vector.broadcast %10 : vector<1x128xf32> to vector<8x128xf32>
    %14 = arith.addf %12, %13 : vector<8x128xf32>
    %cst_11 = arith.constant 0.000000e+00 : f32
    %15 = vector.broadcast %cst_11 : f32 to vector<8x128xf32>
    %16 = arith.maximumf %14, %15 : vector<8x128xf32>
    %c0_12 = arith.constant 0 : index
    %c0_13 = arith.constant 0 : index
    %17 = vector.load %arg6[%c0_12, %c0_13] : memref<128x128xbf16, #tpu.memory_space<vmem>>, vector<128x128xbf16>
    %c0_14 = arith.constant 0 : index
    %c0_15 = arith.constant 0 : index
    %18 = vector.load %arg7[%c0_14, %c0_15] : memref<1x128xf32, #tpu.memory_space<vmem>>, vector<1x128xf32>
    %19 = arith.truncf %16 : vector<8x128xf32> to vector<8x128xbf16>
    %cst_16 = arith.constant dense<0.000000e+00> : vector<8x128xf32>
    %20 = tpu.matmul %19, %17, %cst_16 {dimension_numbers = #tpu.dot_dimension_numbers<[1], [0], [0], [1], [0, 0, 1, 1], [], []>} : vector<8x128xbf16>, vector<128x128xbf16>, vector<8x128xf32> -> vector<8x128xf32>
    %21 = vector.broadcast %18 : vector<1x128xf32> to vector<8x128xf32>
    %22 = arith.addf %20, %21 : vector<8x128xf32>
    %c0_17 = arith.constant 0 : index
    %c0_18 = arith.constant 0 : index
    %23 = vector.load %arg8[%c0_17, %c0_18] : memref<8x128xf32, #tpu.memory_space<vmem>>, vector<8x128xf32>
    tpu.vector_store %arg8[%c0_17, %c0_18], %22 {strides = array<i32>} : memref<8x128xf32, #tpu.memory_space<vmem>>, vector<8x128xf32>,
    return
  }
  func.func @transform_0(%arg0: i32) -> (i32, i32) {
    %c0_i32 = arith.constant 0 : i32
    %c0_i32_0 = arith.constant 0 : i32
    return %arg0, %c0_i32 : i32, i32
  }
  func.func @transform_1(%arg0: i32) -> (i32, i32) {
    %c0_i32 = arith.constant 0 : i32
    %c0_i32_0 = arith.constant 0 : i32
    %c0_i32_1 = arith.constant 0 : i32
    return %c0_i32, %c0_i32_0 : i32, i32
  }
  func.func @transform_2(%arg0: i32) -> (i32, i32) {
    %c0_i32 = arith.constant 0 : i32
    %c0_i32_0 = arith.constant 0 : i32
    %c0_i32_1 = arith.constant 0 : i32
    return %c0_i32, %c0_i32_0 : i32, i32
  }
  func.func @transform_3(%arg0: i32) -> (i32, i32) {
    %c0_i32 = arith.constant 0 : i32
    %c0_i32_0 = arith.constant 0 : i32
    %c0_i32_1 = arith.constant 0 : i32
    return %c0_i32, %c0_i32_0 : i32, i32
  }
  func.func @transform_4(%arg0: i32) -> (i32, i32) {
    %c0_i32 = arith.constant 0 : i32
    %c0_i32_0 = arith.constant 0 : i32
    %c0_i32_1 = arith.constant 0 : i32
    return %c0_i32, %c0_i32_0 : i32, i32
  }
  func.func @transform_5(%arg0: i32) -> (i32, i32) {
    %c0_i32 = arith.constant 0 : i32
    %c0_i32_0 = arith.constant 0 : i32
    %c0_i32_1 = arith.constant 0 : i32
    return %c0_i32, %c0_i32_0 : i32, i32
  }
  func.func @transform_6(%arg0: i32) -> (i32, i32) {
    %c0_i32 = arith.constant 0 : i32
    %c0_i32_0 = arith.constant 0 : i32
    %c0_i32_1 = arith.constant 0 : i32
    return %c0_i32, %c0_i32_0 : i32, i32
  }
  func.func @transform_7(%arg0: i32) -> (i32, i32) {
    %c0_i32 = arith.constant 0 : i32
    %c0_i32_0 = arith.constant 0 : i32
    return %arg0, %c0_i32 : i32, i32
  }
}

</mosaic_0001>

<bundles_post_ra>
// kernel: nn_fc_forward.1
= control target key start
LH: loop header
LB: loop body
LE: loop exit
PB: predicated region body
PF: predicated region fallthrough
CT: control target
= control target key end

     0   :  { %12 = vsyncpa [#allocation3], 0  ;;  %s724_s0 = inlined_call_operand.vmem [shape: f32[8,128], index: 0, kind: input, shape index: {}]   ;;  %s725_s1 = inlined_call_operand.hbm [shape: bf16[128,128], index: 1, kind: input, shape index: {}]   ;;  %s726_s2 = inlined_call_operand.vmem [shape: f32[1,128], index: 2, kind: input, shape index: {}]   ;;  %s727_s3 = inlined_call_operand.hbm [shape: bf16[128,128], index: 3, kind: input, shape index: {}]   ;;  %s728_s4 = inlined_call_operand.vmem [shape: f32[1,128], index: 4, kind: input, shape index: {}]   ;;  %s729_s5 = inlined_call_operand.hbm [shape: bf16[128,128], index: 5, kind: input, shape index: {}]   ;;  %s730_s6 = inlined_call_operand.vmem [shape: f32[1,128], index: 6, kind: input, shape index: {}]   ;;  %s731_s7 = inlined_call_operand.vmem [shape: f32[8,128], index: 7, kind: output, shape index: {}]  }
   0x1   :  { %13 = vsyncpa [#allocation5], 0  ;;  %s623_s24 = smov [#allocation4]   ;;  %s624_s26 = smov [#allocation2]  }
   0x2   :  { %s35_s25 = sshll.u32 %s623_s24, 4  ;;  %s21_s27 = sshll.u32 %s624_s26, 4  ;;  %s36_s25 = int_to_ptr.vmem [resolvable:$true] %s35_s25  ;;  %s22_s27 = int_to_ptr.vmem [resolvable:$true] %s21_s27 }
   0x3   :  { %s567_s28 = scalar_lea.vmem %s36_s25, 1024  ;;  %p572_p1 = scmp.lt.s32.totalorder %s36_s25, %s36_s25 }
   0x4   :  { %p568_p0 = scmp.ne.s32.totalorder %s36_s25, %s567_s28  ;;  %p573_p2 = scmp.lt.s32.totalorder %s567_s28, %s567_s28 }
   0x6   :  { %p574_p3 = por %p573_p2, %p572_p1 }
   0x8   :  { %p575_p4 = pnand %p574_p3, %p568_p0 }
   0xa   :  { %578 = shalt.err (!%p575_p4)
}
   0xb   :  { %s625_s29 = smov 64   ;;  %s626_s30 = smov 4  }
   0xc   :  { %41 = dma.hbm_to_vmem [thread:$0]  %s727_s3, 1024, %s36_s25, [#allocation5], %s625_s29, %s625_s29, %s626_s30  }
   0xd   :  { %s587_s10 = scalar_lea.vmem %s22_s27, 1024  ;;  %p592_p6 = scmp.lt.s32.totalorder %s22_s27, %s22_s27 }
   0xe   :  { %p588_p5 = scmp.ne.s32.totalorder %s22_s27, %s587_s10  ;;  %p593_p7 = scmp.lt.s32.totalorder %s587_s10, %s587_s10 }
  0x10   :  { %p594_p8 = por %p593_p7, %p592_p6 }
  0x12   :  { %p595_p9 = pnand %p594_p8, %p588_p5 }
  0x14   :  { %598 = shalt.err (!%p595_p9)
}
  0x15   :  { %27 = dma.hbm_to_vmem [thread:$0]  %s725_s1, 1024, %s22_s27, [#allocation3], %s625_s29, %s625_s29, %s626_s30  }
  0x16   :  { %s627_s13 = smov [#allocation6]  }
  0x17   :  { %s49_s14 = sshll.u32 %s627_s13, 4  ;;  %s50_s14 = int_to_ptr.vmem [resolvable:$true] %s49_s14 }
  0x18   :  { %s607_s15 = scalar_lea.vmem %s50_s14, 1024  ;;  %p612_p11 = scmp.lt.s32.totalorder %s50_s14, %s50_s14 }
  0x19   :  { %p608_p10 = scmp.ne.s32.totalorder %s50_s14, %s607_s15  ;;  %p613_p12 = scmp.lt.s32.totalorder %s607_s15, %s607_s15 }
  0x1b   :  { %p614_p13 = por %p613_p12, %p612_p11 }
  0x1d   :  { %p615_p0 = pnand %p614_p13, %p608_p10 }
  0x1f   :  { %618 = shalt.err (!%p615_p0)
}
  0x20   :  { %55 = dma.hbm_to_vmem [thread:$0]  %s729_s5, 1024, %s50_s14, [#allocation5], %s625_s29, %s625_s29, %s626_s30  }
  0x21   :  { %619 = dma.done.wait [#allocation3], 1024  }
  0x22   :  { %620 = vsyncadd [#allocation3], 4294966272 }
  0x23   :  { %621 = dma.done.wait [#allocation5], 2048  }
  0x24   :  { %622 = vsyncadd [#allocation5], 4294965248  ;;  %v628_v0 = vmov 0.0   ;;  %vm629_vm0 = vmmov 0   ;;  %v535_v1 = vld [vmem:[#allocation2 + $0x38] sm:$0xff]   ;;  %v536_v2 = vld [vmem:[#allocation2 + $0x30] sm:$0xff]  }
  0x25   :  { %468 = vmatprep.subr.bf16.mxu0 %v628_v0  ;;  %484 = vmatprep.mubr.msk.bf16.mxu0 %vm629_vm0, %v628_v0  ;;  %v537_v3 = vld [vmem:[#allocation2 + $0x28] sm:$0xff]   ;;  %v543_v4 = vld [vmem:[#allocation4 + $0x38] sm:$0xff]   ;;  %v538_v5 = vld [vmem:[#allocation2 + $0x20] sm:$0xff]  }
  0x26   :  { %488 = vmatprep.subr.bf16.mxu1 %v628_v0  ;;  %504 = vmatprep.mubr.msk.bf16.mxu1 %vm629_vm0, %v628_v0  ;;  %v544_v6 = vld [vmem:[#allocation4 + $0x30] sm:$0xff]   ;;  %v539_v7 = vld [vmem:[#allocation2 + $0x18] sm:$0xff]   ;;  %v545_v8 = vld [vmem:[#allocation4 + $0x28] sm:$0xff]  }
  0x27   :  { %469 = vmatpush3.bf16.msra.mxu0 %v535_v1  ;;  %489 = vmatpush3.bf16.msra.mxu1 %v543_v4  ;;  %v540_v9 = vld [vmem:[#allocation2 + $0x10] sm:$0xff]   ;;  %v546_v10 = vld [vmem:[#allocation4 + $0x20] sm:$0xff]   ;;  %v541_v11 = vld [vmem:[#allocation2 + $0x8] sm:$0xff]  }
  0x28   :  { %470 = vmatprep.subr.bf16.mxu0 %v628_v0  ;;  %490 = vmatprep.subr.bf16.mxu1 %v628_v0  ;;  %v547_v12 = vld [vmem:[#allocation4 + $0x18] sm:$0xff]   ;;  %v542_v13 = vld [vmem:[#allocation2] sm:$0xff]   ;;  %v548_v15 = vld [vmem:[#allocation4 + $0x10] sm:$0xff]  }
  0x29   :  { %v68_v14 = vld [vmem:[%s724_s0] sm:$0xff]  ;;  %v549_v17 = vld [vmem:[#allocation4 + $0x8] sm:$0xff]   ;;  %v551_v19 = vld [vmem:[#allocation6 + $0x38] sm:$0xff]  }
  0x2a   :  { %v86_v16 = vpack.c.bf16 %v68_v14, %v68_v14  ;;  %v550_v18 = vld [vmem:[#allocation4] sm:$0xff]   ;;  %v552_v20 = vld [vmem:[#allocation6 + $0x30] sm:$0xff]   ;;  %v553_v21 = vld [vmem:[#allocation6 + $0x28] sm:$0xff]  }
  0x2b   :  { %471 = vmatpush3.bf16.msra.mxu0 %v536_v2  ;;  %491 = vmatpush3.bf16.msra.mxu1 %v544_v6  ;;  %v554_v22 = vld [vmem:[#allocation6 + $0x20] sm:$0xff]   ;;  %v555_v23 = vld [vmem:[#allocation6 + $0x18] sm:$0xff]   ;;  %v556_v24 = vld [vmem:[#allocation6 + $0x10] sm:$0xff]  }
  0x2c   :  { %472 = vmatprep.subr.bf16.mxu0 %v628_v0  ;;  %492 = vmatprep.subr.bf16.mxu1 %v628_v0  ;;  %v414_v25 = vld [vmem:[%s726_s2] ss:$0 sm:$0xff]  ;;  %v557_v33 = vld [vmem:[#allocation6 + $0x8] sm:$0xff]  }
  0x2d   :  { %v558_v34 = vld [vmem:[#allocation6] sm:$0xff]  }
  0x2e   :  { %v423_v35 = vld [vmem:[%s728_s4] ss:$0 sm:$0xff] }
  0x2f   :  { %473 = vmatpush3.bf16.msra.mxu0 %v537_v3  ;;  %493 = vmatpush3.bf16.msra.mxu1 %v545_v8  ;;  %v432_v43 = vld [vmem:[%s730_s6] ss:$0 sm:$0xff] }
  0x30   :  { %474 = vmatprep.subr.bf16.mxu0 %v628_v0  ;;  %494 = vmatprep.subr.bf16.mxu1 %v628_v0 }
  0x33   :  { %475 = vmatpush3.bf16.msra.mxu0 %v538_v5  ;;  %495 = vmatpush3.bf16.msra.mxu1 %v546_v10 }
  0x34   :  { %476 = vmatprep.subr.bf16.mxu0 %v628_v0  ;;  %496 = vmatprep.subr.bf16.mxu1 %v628_v0 }
  0x37   :  { %477 = vmatpush3.bf16.msra.mxu0 %v539_v7  ;;  %497 = vmatpush3.bf16.msra.mxu1 %v547_v12 }
  0x38   :  { %478 = vmatprep.subr.bf16.mxu0 %v628_v0  ;;  %498 = vmatprep.subr.bf16.mxu1 %v628_v0 }
  0x3b   :  { %479 = vmatpush3.bf16.msra.mxu0 %v540_v9  ;;  %499 = vmatpush3.bf16.msra.mxu1 %v548_v15 }
  0x3c   :  { %480 = vmatprep.subr.bf16.mxu0 %v628_v0  ;;  %500 = vmatprep.subr.bf16.mxu1 %v628_v0 }
  0x3f   :  { %481 = vmatpush3.bf16.msra.mxu0 %v541_v11  ;;  %501 = vmatpush3.bf16.msra.mxu1 %v549_v17 }
  0x40   :  { %482 = vmatprep.subr.bf16.mxu0 %v628_v0  ;;  %502 = vmatprep.subr.bf16.mxu1 %v628_v0 }
  0x43   :  { %483 = vmatpush3.bf16.msra.mxu0 %v542_v13  ;;  %503 = vmatpush3.bf16.msra.mxu1 %v550_v18 }
  0x44   :  { %508 = vmatprep.subr.bf16.mxu0 %v628_v0 }
  0x46   :  { %485 = vmatmul.mubr.bf16.vlgmr.msra.gmra.mxu0 %v86_v16 }
  0x47   :  { %524 = vmatprep.mubr.msk.bf16.mxu0 %vm629_vm0, %v628_v0  ;;  %509 = vmatpush3.bf16.msra.mxu0 %v551_v19 }
  0x48   :  { %510 = vmatprep.subr.bf16.mxu0 %v628_v0 }
  0x4b   :  { %511 = vmatpush3.bf16.msra.mxu0 %v552_v20 }
  0x4c   :  { %512 = vmatprep.subr.bf16.mxu0 %v628_v0 }
  0x4f   :  { %513 = vmatpush3.bf16.msra.mxu0 %v553_v21 }
  0x50   :  { %514 = vmatprep.subr.bf16.mxu0 %v628_v0 }
  0x53   :  { %515 = vmatpush3.bf16.msra.mxu0 %v554_v22 }
  0x54   :  { %516 = vmatprep.subr.bf16.mxu0 %v628_v0 }
  0x57   :  { %517 = vmatpush3.bf16.msra.mxu0 %v555_v23 }
  0x58   :  { %518 = vmatprep.subr.bf16.mxu0 %v628_v0 }
  0x5b   :  { %519 = vmatpush3.bf16.msra.mxu0 %v556_v24 }
  0x5c   :  { %520 = vmatprep.subr.bf16.mxu0 %v628_v0 }
  0x5f   :  { %521 = vmatpush3.bf16.msra.mxu0 %v557_v33 }
  0x60   :  { %522 = vmatprep.subr.bf16.mxu0 %v628_v0 }
  0x63   :  { %523 = vmatpush3.bf16.msra.mxu0 %v558_v34 }
 0x106   :  { %v175_v26 = vpop.f32.mrf.mxu0 }
 0x107   :  { %v176_v27 = vadd.f32 %v414_v25, %v175_v26 }
 0x108   :  { %v486_v28 = vpop.f32.mrf.mxu0 }
 0x109   :  { %v181_v29 = vmax.f32 %v176_v27, 0.0 }
 0x10a   :  { %v178_v30 = vpop.f32.mrf.mxu0 }
 0x10b   :  { %v199_v31 = vpack.c.bf16 %v181_v29, %v181_v29 }
 0x10c   :  { %v487_v32 = vpop.f32.mrf.mxu0 }
 0x10d   :  { %505 = vmatmul.mubr.bf16.vlgmr.msra.gmra.mxu1 %v199_v31 }
 0x1cd   :  { %v288_v36 = vpop.f32.mrf.mxu1 }
 0x1ce   :  { %v289_v37 = vadd.f32 %v423_v35, %v288_v36 }
 0x1cf   :  { %v506_v38 = vpop.f32.mrf.mxu1 }
 0x1d0   :  { %v294_v39 = vmax.f32 %v289_v37, 0.0 }
 0x1d1   :  { %v291_v40 = vpop.f32.mrf.mxu1 }
 0x1d2   :  { %v312_v41 = vpack.c.bf16 %v294_v39, %v294_v39 }
 0x1d3   :  { %v507_v42 = vpop.f32.mrf.mxu1 }
 0x1d4   :  { %525 = vmatmul.mubr.bf16.vlgmr.msra.gmra.mxu0 %v312_v41 }
 0x294   :  { %v401_v44 = vpop.f32.mrf.mxu0 }
 0x295   :  { %v402_v45 = vadd.f32 %v432_v43, %v401_v44 }
 0x296   :  { %v526_v46 = vpop.f32.mrf.mxu0 }
 0x297   :  { %407 = vst [vmem:[%s731_s7] sm:$0xff] %v402_v45 }
 0x298   :  { %v404_v47 = vpop.f32.mrf.mxu0 }
 0x29a   :  { %v527_v48 = vpop.f32.mrf.mxu0 }
 0x29b   :  { %412 = vsyncpa [#allocation3], 1 }
 0x29c   :  { %413 = vsyncpa [#allocation5], 1 }

</bundles_post_ra>
